<compile_context>
chip_gen: v6e
topology: v6e:2x2x1
jax: 0.10.0
libtpu: 0.0.40
codegen_flags: <defaults>
</compile_context>

<pallas_src>
import math
import functools

import jax
import jax.numpy as jnp
from jax import lax
from jax.experimental import pallas as pl
from jax.experimental.pallas import tpu as pltpu


def _vmem_limit_bytes():
    """Generation-aware scoped-VMEM limit (~3/4 of physical, capped at 100 MiB)."""
    try:
        cap = pltpu.get_tpu_info().vmem_capacity_bytes
        return int(min(cap * 3 // 4, 100 * 1024 * 1024))
    except Exception:  # older jax / no TPU info available: safe everywhere
        return 48 * 1024 * 1024


def _pick_tile(s, target):
    """Largest tile <= target dividing s, preferring multiples of 16 (bf16
    sublane packing), then 8.  Falls back to s itself for awkward sizes."""
    if s <= target:
        return s
    for step in (16, 8):
        t = (target // step) * step
        while t >= step:
            if s % t == 0:
                return t
            t -= step
    # TODO(synk): pad the sequence instead of one oversized block for prime S.
    return s


# ----------------------------------------------------------------------------
# Kernel 1: qkv projection  x @ W_in_t + b_in  -> lane-dense (TS, 3D) block.
# ----------------------------------------------------------------------------
def _qkv_proj_kernel(x_ref, w_ref, b_ref, qkv_ref):
    x = x_ref[0]                                                   # (TS, D)
    qkv = jnp.dot(x, w_ref[...], preferred_element_type=jnp.float32)  # (TS, 3D)
    qkv = qkv + b_ref[...].astype(jnp.float32)                     # (1, 3D) bcast
    qkv_ref[0] = qkv.astype(qkv_ref.dtype)                         # lane-dense store


# ----------------------------------------------------------------------------
# Kernel 2: flash attention (online softmax over kv tiles) + fused out_proj.
# ----------------------------------------------------------------------------
def _flash_attn_outproj_kernel(q_ref, k_ref, v_ref, w_out_ref, b_out_ref, o_ref,
                               m_sc, l_sc, acc_sc,
                               *, tq, tk, causal_mask):
    iq = pl.program_id(1)
    ik = pl.program_id(2)

    @pl.when(ik == 0)
    def _init():
        m_sc[...] = jnp.full(m_sc.shape, -jnp.inf, dtype=jnp.float32)
        l_sc[...] = jnp.zeros(l_sc.shape, jnp.float32)
        acc_sc[...] = jnp.zeros(acc_sc.shape, jnp.float32)

    def _online_update(apply_mask):
        q = q_ref[0]                    # (H, TQ, dh)   (already scaled by 1/sqrt(dh))
        k = k_ref[0]                    # (H, TK, dh)
        v = v_ref[0]                    # (H, TK, dh)

        # Batched over heads: 'hqd,hkd->hqk' on the MXU, f32 accumulation.
        s = jnp.einsum('hqd,hkd->hqk', q, k,
                       preferred_element_type=jnp.float32)          # (H, TQ, TK)
        if apply_mask:
            # Only straddling tiles pay for iota/compare/select.
            row = iq * tq + lax.broadcasted_iota(jnp.int32, (tq, tk), 0)
            col = ik * tk + lax.broadcasted_iota(jnp.int32, (tq, tk), 1)
            s = jnp.where((col > row)[None, :, :], -jnp.inf, s)

        # Online softmax (f32 elementwise; exp on the EUP).
        m_prev = m_sc[...]                                          # (H, TQ, 1)
        m_new = jnp.maximum(m_prev, jnp.max(s, axis=-1, keepdims=True))
        alpha = jnp.exp(m_prev - m_new)
        p = jnp.exp(s - m_new)                                      # (H, TQ, TK)
        l_sc[...] = alpha * l_sc[...] + jnp.sum(p, axis=-1, keepdims=True)
        acc_sc[...] = alpha * acc_sc[...] + jnp.einsum(
            'hqk,hkd->hqd', p.astype(v.dtype), v,
            preferred_element_type=jnp.float32)                     # (H, TQ, dh)
        m_sc[...] = m_new

    if causal_mask:
        q_lo = iq * tq
        q_hi = q_lo + (tq - 1)
        k_lo = ik * tk
        k_hi = k_lo + (tk - 1)

        # Fully-unmasked interior tile: fast unmasked path.
        @pl.when(k_hi <= q_lo)
        def _interior():
            _online_update(apply_mask=False)

        # Diagonal-straddling tile: masked path.
        @pl.when((k_hi > q_lo) & (k_lo <= q_hi))
        def _straddle():
            _online_update(apply_mask=True)
        # Fully-masked kv tiles (k_lo > q_hi): no compute; their DMA is also
        # elided by the clamped k/v index_maps below.
    else:
        _online_update(apply_mask=False)

    @pl.when(ik == pl.num_programs(2) - 1)
    def _finalize():
        inv_l = pl.reciprocal(l_sc[...], approx=True)               # (H, TQ, 1)
        attn = (acc_sc[...] * inv_l).astype(w_out_ref.dtype)        # (H, TQ, dh)
        # Fused out_proj: batched over heads then head-sum -> lane-dense (TQ, D).
        per = jnp.einsum('hqd,hde->hqe', attn, w_out_ref[...],
                         preferred_element_type=jnp.float32)        # (H, TQ, D)
        y = jnp.sum(per, axis=0) + b_out_ref[...].astype(jnp.float32)
        o_ref[0] = y.astype(o_ref.dtype)


# ----------------------------------------------------------------------------
# Wrapper
# ----------------------------------------------------------------------------
def self_attention(x, w_in, b_in, w_out, b_out, *, n_heads, causal_mask=False,
                   compute_dtype=jnp.bfloat16, q_tile=None, kv_tile=None):
    B, S, D = x.shape
    assert D % n_heads == 0, "d_embed must be divisible by n_heads"
    d_head = D // n_heads
    cd = x.dtype if compute_dtype is None else compute_dtype
    vmem_limit = _vmem_limit_bytes()

    # Tile sizes (review #1): TQ up to 256, TS/TK up to 512 (TK=256 is also fine
    # on v7x; these all fit comfortably in its 64 MiB VMEM at typical d_embed).
    TS = _pick_tile(S, 512)
    TQ = _pick_tile(S, 256) if q_tile is None else q_tile
    TK = _pick_tile(S, 512) if kv_tile is None else kv_tile
    assert S % TQ == 0 and S % TK == 0 and S % TS == 0

    # Host-side weight prep:
    #  * W_in -> (D, 3D) so kernel 1 does a plain (TS,D)@(D,3D) dot (review #10),
    #  * fold 1/sqrt(d_head) into the q columns of W_in / b_in (review #8),
    #  * W_out -> (H, d_head, D) head-sliced view for the fused out_proj.
    scale = 1.0 / math.sqrt(d_head)
    scale_vec = jnp.concatenate([jnp.full((D,), scale, jnp.float32),
                                 jnp.ones((2 * D,), jnp.float32)])
    w_in_t = (w_in.astype(jnp.float32).T * scale_vec[None, :]).astype(cd)   # (D, 3D)
    b_in_s = (b_in.astype(jnp.float32) * scale_vec).reshape(1, 3 * D)       # (1, 3D) f32
    w_out_r = w_out.astype(jnp.float32).T.reshape(D, n_heads * 0 + n_heads, d_head) \
        if False else w_out.T.reshape(n_heads, d_head, D).astype(cd)        # (H, dh, D)
    b_out2 = b_out.reshape(1, D).astype(jnp.float32)                        # (1, D)

    xc = x.astype(cd)

    # ---- Kernel 1: qkv projection -> lane-dense (B, S, 3D) ----
    qkv = pl.pallas_call(
        _qkv_proj_kernel,
        out_shape=jax.ShapeDtypeStruct((B, S, 3 * D), cd),
        grid_spec=pltpu.PrefetchScalarGridSpec(
            num_scalar_prefetch=0,
            grid=(B, S // TS),
            in_specs=[
                pl.BlockSpec((1, TS, D), lambda b, t: (b, t, 0)),
                pl.BlockSpec((D, 3 * D), lambda b, t: (0, 0)),      # resident weight
                pl.BlockSpec((1, 3 * D), lambda b, t: (0, 0)),      # resident bias
            ],
            out_specs=pl.BlockSpec((1, TS, 3 * D), lambda b, t: (b, t, 0)),
        ),
        compiler_params=pltpu.CompilerParams(
            dimension_semantics=("parallel", "parallel"),
            vmem_limit_bytes=vmem_limit),
    )(xc, w_in_t, b_in_s)

    # Head-major relayout outside the kernel (pure XLA layout plumbing, review #3).
    qkv5 = qkv.reshape(B, S, 3, n_heads, d_head)
    q = jnp.transpose(qkv5[:, :, 0], (0, 2, 1, 3))   # (B, H, S, dh), q already scaled
    k = jnp.transpose(qkv5[:, :, 1], (0, 2, 1, 3))
    v = jnp.transpose(qkv5[:, :, 2], (0, 2, 1, 3))

    # ---- Kernel 2: flash attention + fused out_proj ----
    if causal_mask:
        # Clamp the kv block index to the causal bound so dead kv tiles reuse
        # the already-resident block and Pallas elides their DMA (review #4).
        def kv_map(b, iq, ik, _tq=TQ, _tk=TK):
            bound = (iq * _tq + (_tq - 1)) // _tk
            return (b, 0, jnp.minimum(ik, bound), 0)
    else:
        def kv_map(b, iq, ik):
            return (b, 0, ik, 0)

    attn_kernel = functools.partial(
        _flash_attn_outproj_kernel, tq=TQ, tk=TK, causal_mask=causal_mask)

    y = pl.pallas_call(
        attn_kernel,
        out_shape=jax.ShapeDtypeStruct((B, S, D), x.dtype),
        grid_spec=pltpu.PrefetchScalarGridSpec(
            num_scalar_prefetch=0,
            grid=(B, S // TQ, S // TK),
            in_specs=[
                pl.BlockSpec((1, n_heads, TQ, d_head),
                             lambda b, iq, ik: (b, 0, iq, 0)),
                pl.BlockSpec((1, n_heads, TK, d_head), kv_map),
                pl.BlockSpec((1, n_heads, TK, d_head), kv_map),
                pl.BlockSpec((n_heads, d_head, D), lambda b, iq, ik: (0, 0, 0)),
                pl.BlockSpec((1, D), lambda b, iq, ik: (0, 0)),
            ],
            out_specs=pl.BlockSpec((1, TQ, D), lambda b, iq, ik: (b, iq, 0)),
            scratch_shapes=[
                pltpu.VMEM((n_heads, TQ, 1), jnp.float32),        # running max
                pltpu.VMEM((n_heads, TQ, 1), jnp.float32),        # running sum
                pltpu.VMEM((n_heads, TQ, d_head), jnp.float32),   # accumulator
            ],
        ),
        compiler_params=pltpu.CompilerParams(
            dimension_semantics=("parallel", "parallel", "arbitrary"),
            vmem_limit_bytes=vmem_limit),
    )(q, k, v, w_out_r, b_out2)
    return y


# ----------------------------------------------------------------------------
# Pure-JAX reference matching the PyTorch forward exactly.
# ----------------------------------------------------------------------------
def self_attention_ref(x, w_in, b_in, w_out, b_out, *, n_heads, causal_mask=False):
    B, S, D = x.shape
    d_head = D // n_heads
    qkv = jnp.einsum('bsd,ed->bse', x, w_in) + b_in
    q, k, v = jnp.split(qkv, 3, axis=-1)

    def heads(t):
        return t.reshape(B, S, n_heads, d_head).transpose(0, 2, 1, 3)

    q, k, v = heads(q), heads(k), heads(v)
    w = jnp.einsum('bhqd,bhkd->bhqk', q, k)
    if causal_mask:
        mask = jnp.triu(jnp.ones((S, S), dtype=bool), k=1)
        w = jnp.where(mask, -jnp.inf, w)
    w = w / math.sqrt(d_head)
    w = jax.nn.softmax(w, axis=-1)
    out = jnp.einsum('bhqk,bhkd->bhqd', w, v)
    out = out.transpose(0, 2, 1, 3).reshape(B, S, D)
    return jnp.einsum('bsd,ed->bse', out, w_out) + b_out


if __name__ == "__main__":
    def make_params(key, D):
        kw1, kb1, kw2, kb2 = jax.random.split(key, 4)
        bound = 1.0 / math.sqrt(D)
        w_in = jax.random.uniform(kw1, (3 * D, D), jnp.float32, -bound, bound)
        b_in = jax.random.uniform(kb1, (3 * D,), jnp.float32, -bound, bound)
        w_out = jax.random.uniform(kw2, (D, D), jnp.float32, -bound, bound)
        b_out = jax.random.uniform(kb2, (D,), jnp.float32, -bound, bound)
        return w_in, b_in, w_out, b_out

    key = jax.random.PRNGKey(0)
    kx1, kp, kx2 = jax.random.split(key, 3)

    # Case 1: small module-spec shape (single tile), f32 compute path.
    B, S, D, H = 2, 8, 32, 4
    x = jax.random.normal(kx1, (B, S, D), jnp.float32)
    w_in, b_in, w_out, b_out = make_params(kp, D)
    for causal in (False, True):
        y = jax.block_until_ready(
            self_attention(x, w_in, b_in, w_out, b_out, n_heads=H,
                           causal_mask=causal, compute_dtype=jnp.float32))
        y_ref = self_attention_ref(x, w_in, b_in, w_out, b_out,
                                   n_heads=H, causal_mask=causal)
        err = jnp.max(jnp.abs(y - y_ref))
        assert err < 1e-2, f"f32 mismatch (causal={causal}): max abs err {err}"

    # Case 2: multi-tile flash grid (4 q-tiles x 4 kv-tiles) exercising the
    # causal DMA-elision / straddle-vs-interior mask paths, f32 compute.
    B, S, D, H = 2, 256, 64, 4
    x = jax.random.normal(kx2, (B, S, D), jnp.float32)
    w_in, b_in, w_out, b_out = make_params(kp, D)
    for causal in (False, True):
        y = jax.block_until_ready(
            self_attention(x, w_in, b_in, w_out, b_out, n_heads=H,
                           causal_mask=causal, compute_dtype=jnp.float32,
                           q_tile=64, kv_tile=64))
        y_ref = self_attention_ref(x, w_in, b_in, w_out, b_out,
                                   n_heads=H, causal_mask=causal)
        err = jnp.max(jnp.abs(y - y_ref))
        assert err < 1e-2, f"f32 multi-tile mismatch (causal={causal}): {err}"

    # Default bf16 MXU-operand path (f32 accumulation / softmax), looser tol.
    for causal in (False, True):
        y = jax.block_until_ready(
            self_attention(x, w_in, b_in, w_out, b_out, n_heads=H,
                           causal_mask=causal))
        y_ref = self_attention_ref(x, w_in, b_in, w_out, b_out,
                                   n_heads=H, causal_mask=causal)
        err = jnp.max(jnp.abs(y.astype(jnp.float32) - y_ref))
        assert err < 2e-1, f"bf16 mismatch (causal={causal}): max abs err {err}"

    print("KERNEL_OK")
</pallas_src>

<mosaic_0001>
module attributes {stable_mosaic.version = 11 : i64} {
  func.func @_qkv_proj_kernel(%arg0: i32, %arg1: i32, %arg2: memref<1x8x32xf32, #tpu.memory_space<vmem>>, %arg3: memref<32x96xf32, #tpu.memory_space<vmem>>, %arg4: memref<1x96xf32, #tpu.memory_space<vmem>>, %arg5: memref<1x8x96xf32, #tpu.memory_space<vmem>>) attributes {dimension_semantics = [#tpu.dimension_semantics<parallel>, #tpu.dimension_semantics<parallel>], iteration_bounds = array<i64: 2, 1>, scalar_prefetch = 0 : i64, scratch_operands = 0 : i64, tpu.core_type = #tpu.core_type<tc>, window_params = [{transform_indices = @transform_0, window_bounds = array<i64: 1, 8, 32>}, {pipeline_mode = #tpu.pipeline_mode<synchronous>, transform_indices = @transform_1, window_bounds = array<i64: 32, 96>}, {pipeline_mode = #tpu.pipeline_mode<synchronous>, transform_indices = @transform_2, window_bounds = array<i64: 1, 96>}, {transform_indices = @transform_3, window_bounds = array<i64: 1, 8, 96>}]} {
    %c0 = arith.constant 0 : index
    %c0_0 = arith.constant 0 : index
    %c0_1 = arith.constant 0 : index
    %0 = vector.load %arg2[%c0, %c0_0, %c0_1] : memref<1x8x32xf32, #tpu.memory_space<vmem>>, vector<1x8x32xf32>
    %1 = vector.shape_cast %0 : vector<1x8x32xf32> to vector<8x32xf32>
    %c0_2 = arith.constant 0 : index
    %c0_3 = arith.constant 0 : index
    %2 = vector.load %arg3[%c0_2, %c0_3] : memref<32x96xf32, #tpu.memory_space<vmem>>, vector<32x96xf32>
    %cst = arith.constant dense<0.000000e+00> : vector<8x96xf32>
    %3 = tpu.matmul %1, %2, %cst {dimension_numbers = #tpu.dot_dimension_numbers<[1], [0], [0], [1], [0, 0, 1, 1], [], []>} : vector<8x32xf32>, vector<32x96xf32>, vector<8x96xf32> -> vector<8x96xf32>
    %c0_4 = arith.constant 0 : index
    %c0_5 = arith.constant 0 : index
    %4 = vector.load %arg4[%c0_4, %c0_5] : memref<1x96xf32, #tpu.memory_space<vmem>>, vector<1x96xf32>
    %5 = vector.broadcast %4 : vector<1x96xf32> to vector<8x96xf32>
    %6 = arith.addf %3, %5 : vector<8x96xf32>
    %c0_6 = arith.constant 0 : index
    %c0_7 = arith.constant 0 : index
    %c0_8 = arith.constant 0 : index
    %7 = vector.load %arg5[%c0_6, %c0_7, %c0_8] : memref<1x8x96xf32, #tpu.memory_space<vmem>>, vector<1x8x96xf32>
    %8 = vector.shape_cast %7 : vector<1x8x96xf32> to vector<8x96xf32>
    %9 = vector.shape_cast %6 : vector<8x96xf32> to vector<1x8x96xf32>
    tpu.vector_store %arg5[%c0_6, %c0_7, %c0_8], %9 {strides = array<i32>} : memref<1x8x96xf32, #tpu.memory_space<vmem>>, vector<1x8x96xf32>,
    return
  }
  func.func @transform_0(%arg0: i32, %arg1: i32) -> (i32, i32, i32) {
    %c0_i32 = arith.constant 0 : i32
    %c0_i32_0 = arith.constant 0 : i32
    return %arg0, %arg1, %c0_i32 : i32, i32, i32
  }
  func.func @transform_1(%arg0: i32, %arg1: i32) -> (i32, i32) {
    %c0_i32 = arith.constant 0 : i32
    %c0_i32_0 = arith.constant 0 : i32
    %c0_i32_1 = arith.constant 0 : i32
    return %c0_i32, %c0_i32_0 : i32, i32
  }
  func.func @transform_2(%arg0: i32, %arg1: i32) -> (i32, i32) {
    %c0_i32 = arith.constant 0 : i32
    %c0_i32_0 = arith.constant 0 : i32
    %c0_i32_1 = arith.constant 0 : i32
    return %c0_i32, %c0_i32_0 : i32, i32
  }
  func.func @transform_3(%arg0: i32, %arg1: i32) -> (i32, i32, i32) {
    %c0_i32 = arith.constant 0 : i32
    %c0_i32_0 = arith.constant 0 : i32
    return %arg0, %arg1, %c0_i32 : i32, i32, i32
  }
}

</mosaic_0001>

<bundles_post_ra>
// kernel: tpu_custom_call.1
= control target key start
LH: loop header
LB: loop body
LE: loop exit
PB: predicated region body
PF: predicated region fallthrough
CT: control target
= control target key end

     0   :  { %8 = vsyncpa [#allocation3], 0  ;;  %s864_s0 = inlined_call_operand.hbm [shape: f32[2,8,32], index: 0, kind: input, shape index: {}]   ;;  %s865_s1 = inlined_call_operand.hbm [shape: f32[32,96], index: 1, kind: input, shape index: {}]   ;;  %s866_s2 = inlined_call_operand.vmem [shape: f32[1,96], index: 2, kind: input, shape index: {}]   ;;  %s867_s3 = inlined_call_operand.hbm [shape: f32[2,8,96], index: 3, kind: output, shape index: {}]  }
   0x1   :  { %10 = vsyncpa [#allocation3 + $0x1], 0 }
   0x2   :  { %11 = vsyncpa [#allocation6], 0 }
   0x3   :  { %12 = vsyncpa [#allocation4], 0 }
   0x4   :  { %14 = vsyncpa [#allocation4 + $0x1], 0  ;;  %s688_s12 = smov 0   ;;  %s690_s13 = smov 0  }
   0x5   :  { %s692_s14 = smov 0   ;;  %s694_s15 = smov 0  }
   0x6   :  { %s696_s16 = smov 0   ;;  %s698_s17 = smov 0  }
   0x7 LB: > { %s411_s18 = sadd.s32 4294967295, %s659_s17   ;;  %s412_s19 = sadd.s32 4294967294, %s659_s17   ;;  %s659_s17 = sphi %s698_s17, %s20_s17   ;;  %s655_s16 = sphi %s696_s16, %s885_s16   ;;  %s651_s15 = sphi %s694_s15, %s884_s15   ;;  %s647_s14 = sphi %s692_s14, %s883_s14   ;;  %s643_s13 = sphi %s690_s13, %s882_s13   ;;  %s639_s12 = sphi %s688_s12, %s881_s12  }
   0x8   : > { %p54_p0 = scmp.ne.s32.totalorder %s643_s13, %s639_s12  ;;  %p722_p1 = scmp.eq.s32.totalorder %s411_s18, 0 }
   0x9   : > { %p726_p2 = scmp.eq.s32.totalorder %s411_s18, 1  ;;  %p128_p3 = scmp.eq.s32.totalorder %s412_s19, 1 }
   0xa   : > { %p732_p4 = por %p722_p1, %p54_p0  ;;  %p413_p5 = scmp.ge.s32.totalorder %s659_s17, 1 }
   0xb   : > { %p737_p6 = por %p128_p3, %p54_p0  ;;  %p135_p7 = scmp.lt.s32.totalorder %s659_s17, 3 }
   0xc   : > { %s871_s22 = scalar_select %p732_p4, 1, 0 }
   0xd   : > { %s872_s23 = scalar_select %p737_p6, 1, 0 }
   0xe   : > { %p742_p8 = pnand %p413_p5, %p135_p7  ;;  %s661_s25 = smov [#allocation5]  }
   0xf   : > { %s147_s26 = sshll.u32 %s661_s25, 4  ;;  %s32_s28 = sadd.s32 1, %s655_s16  ;;  %s148_s26 = int_to_ptr.vmem [resolvable:$true] %s147_s26 }
  0x10   : > { %p452_p9 = pneg %p742_p8  ;;  %s532_s29 = scalar_lea.vmem %s148_s26, 512 }
  0x11   : > { %p533_p13 = scmp.ne.s32.totalorder %s148_s26, %s532_s29  ;;  %p540_p5 = scmp.lt.s32.totalorder %s148_s26, %s148_s26 }
  0x12   : > { %p751_p11 = pnand %p452_p9, %p722_p1  ;;  %p541_p7 = scmp.lt.s32.totalorder %s532_s29, %s532_s29 }
  0x14   : > { %p523_p12 = pneg %p751_p11  ;;  %p542_p6 = por %p541_p7, %p540_p5 }
  0x16   : > { %p535_p0 = pnand %p533_p13, %p523_p12 }
  0x18   : > { %p536_p3 = pneg %p535_p0 }
  0x1a   : > { %p543_p4 = pnand %p542_p6, %p536_p3 }
  0x1c   : > { %546 = shalt.err (!%p543_p4)
}
  0x1d   : > { %s662_s30 = smov 128   ;;  %s663_s4 = smov 8  }
  0x1e   : > { %455 = dma.hbm_to_vmem [thread:$0]  (!%p751_p11), %s865_s1, 512, %s148_s26, [#allocation6], %s662_s30, %s662_s30, %s663_s4  }
  0x1f   : > { %p34_p6 = scmp.ge.s32.totalorder %s32_s28, 2  ;;  %s41_s7 = sadd.s32 1, %s647_s14 }
  0x20   : > { %p48_p4 = scmp.ne.s32.totalorder %s647_s14, %s643_s13  ;;  %p49_p9 = scmp.eq.s32.totalorder %s659_s17, 0 }
  0x21   : > { %s887_s28 = smov (%p34_p6, %s32_s28), 0  ;;  %p465_p0 = scmp.lt.s32.totalorder %s659_s17, 2 }
  0x22   : > { %p769_p12 = por %p49_p9, %p48_p4  ;;  %p775_p13 = por %p726_p2, %p48_p4 }
  0x23   : > { %s36_s10 = ssub.s32 %s655_s16, %s887_s28  ;;  %s164_s11 = sand.u32 1, %s647_s14  }
  0x24   : > { %p39_p11 = scmp.eq.s32.totalorder %s36_s10, 0  ;;  %s416_s18 = sshll.u32 %s164_s11, 3 }
  0x25   : > { %s417_s25 = sshll.u32 %s655_s16, 7  ;;  %s168_s30 = scalar_lea.vmem [#allocation2], %s416_s18 }
  0x26   : > { %s784_s19 = scalar_select %p39_p11, %s647_s14, %s41_s7  }
  0x27   : > { %s174_s29 = scalar_lea.hbm %s864_s0, %s417_s25  ;;  %s176_s4 = sshll.u32 %s168_s30, 4  ;;  %s177_s4 = int_to_ptr.vmem [resolvable:$true] %s176_s4 }
  0x28   : > { %p792_p2 = pnand %p465_p0, %p769_p12  ;;  %s165_s5 = scalar_lea.sflag [#allocation3], %s164_s11 }
  0x29   : > { %s560_s6 = scalar_lea.vmem %s177_s4, 128  ;;  %s664_s7 = smov [#allocation2]  }
  0x2a   : > { %p549_p3 = pneg %p792_p2  ;;  %p561_p5 = scmp.ne.s32.totalorder %s177_s4, %s560_s6 }
  0x2b   : > { %s565_s10 = sshll.u32 %s664_s7, 4  ;;  %s566_s10 = int_to_ptr.vmem [resolvable:$false] %s565_s10 }
  0x2c   : > { %p563_p7 = pnand %p561_p5, %p549_p3  ;;  %s567_s25 = scalar_lea.vmem %s566_s10, 256 }
  0x2d   : > { %p568_p4 = scmp.lt.s32.totalorder %s177_s4, %s566_s10  ;;  %p569_p9 = scmp.lt.s32.totalorder %s567_s25, %s560_s6 }
  0x2e   : > { %p564_p6 = pneg %p563_p7 }
  0x2f   : > { %p570_p11 = por %p569_p9, %p568_p4 }
  0x31   : > { %p571_p10 = pnand %p570_p11, %p564_p6 }
  0x33   : > { %574 = shalt.err (!%p571_p10)
}
  0x34   : > { %459 = dma.hbm_to_vmem [thread:$0]  (!%p792_p2), %s174_s29, 128, %s177_s4, %s165_s5  }
  0x35   : > { %185 = sbr.rel (%p742_p8) target bundleno = 278 (0x116), region = 32  ;;  %s803_s8 = sand.u32 (!%p742_p8), 1, %s643_s13  }
  0x36   : > { %s419_s11 = sshll.u32 (!%p742_p8), %s803_s8, 3  ;;  %s188_s18 = scalar_lea.sflag (!%p742_p8), [#allocation3], %s803_s8 }
  0x37   : > { %s191_s26 = scalar_lea.vmem (!%p742_p8), [#allocation2], %s419_s11  ;;  %p878_p12 = scmp.ne.s32.totalorder (!%p742_p8), %s871_s22, 0 }
  0x3a   : > { %626 = dma.done.wait (%p878_p12), %s188_s18, 128  }
  0x3b   : > { %628 = vsyncadd (%p878_p12), %s188_s18, 4294967168 }
  0x3c   : > { %630 = dma.done.wait (%p722_p1), [#allocation6], 512  }
  0x3d   : > { %632 = vsyncadd (%p722_p1), [#allocation6], 4294966784  ;;  %v665_v0 = vmov 0.0   ;;  %vm666_vm0 = vmmov 0   ;;  %v222_v1 = vld [vmem:[#allocation5 + $0x18] sm:$0xff]  ;;  %v221_v2 = vld [vmem:[#allocation5 + $0x10] sm:$0xff] }
  0x3e   : > { %433 = vmatprep.subr.mxu0 %v665_v0  ;;  %441 = vmatprep.mubr.msk.f32.mxu0 %vm666_vm0, %v665_v0  ;;  %v220_v3 = vld [vmem:[#allocation5 + $0x8] sm:$0xff]  ;;  %v219_v4 = vld [vmem:[#allocation5] sm:$0xff]  ;;  %v218_v5 = vld [vmem:[%s191_s26] sm:$0xff]  ;;  %vm230_vm1 = vcmask 261120   ;;  %s425_s24 = sshll.u32 %s651_s15, 7  ;;  %s217_s27 = scalar_lea.vmem [#allocation7], %s419_s11 }
  0x3f   : > { %434 = vmatpush3.msra.mxu0 %v222_v1  ;;  %v422_v6 = vld [vmem:[%s866_s2] ss:$0 sm:$0xff]  ;;  %s321_s29 = sshll.u32 %s217_s27, 4  ;;  %vm304_vm2 = vcmask 785408   ;;  %s822_s21 = scalar_lea.hbm %s867_s3, %s425_s24  ;;  %s322_s29 = int_to_ptr.vmem [resolvable:$true] %s321_s29 }
  0x40   : > { %435 = vmatprep.subr.mxu0 %v665_v0  ;;  %s307_s5 = scalar_lea.sflag [#allocation4], %s803_s8  ;;  %s575_s6 = scalar_lea.vmem %s322_s29, 128 }
  0x41   : > { %436 = vmatpush3.msra.mxu0 %v221_v2  ;;  %p576_p1 = scmp.ne.s32.totalorder %s322_s29, %s575_s6  ;;  %s667_s15 = smov [#allocation7]  }
  0x42   : > { %437 = vmatprep.subr.mxu0 %v665_v0  ;;  %s579_s7 = sshll.u32 %s667_s15, 4  ;;  %s580_s7 = int_to_ptr.vmem [resolvable:$false] %s579_s7 }
  0x43   : > { %438 = vmatpush3.msra.mxu0 %v220_v3  ;;  %p577_p8 = pnand %p576_p1, %p775_p13  ;;  %s581_s10 = scalar_lea.vmem %s580_s7, 256 }
  0x44   : > { %439 = vmatprep.subr.mxu0 %v665_v0  ;;  %p582_p0 = scmp.lt.s32.totalorder %s322_s29, %s580_s7  ;;  %p583_p2 = scmp.lt.s32.totalorder %s581_s10, %s575_s6 }
  0x45   : > { %440 = vmatpush3.msra.mxu0 %v219_v4  ;;  %p578_p10 = pneg %p577_p8 }
  0x46   : > { %442 = vmatmul.mubr.msk.f32.vlgmr.msra.gmra.mxu0 %vm230_vm1, %v218_v5  ;;  %p584_p3 = por %p583_p2, %p582_p0 }
  0x48   : > { %p585_p5 = pnand %p584_p3, %p578_p10 }
 0x106   : > { %v300_v7 = vpop.f32.mrf.mxu0 }
 0x107   : > { %v301_v8 = vadd.f32 %v422_v6, %v300_v7 }
 0x108   : > { %v443_v9 = vpop.f32.mrf.mxu0 }
 0x109   : > { %305 = vst.msk [vmem:[%s217_s27] sm:$0xff] %vm304_vm2, %v301_v8 }
 0x10a   : > { %588 = shalt.err (!%p585_p5)
}
 0x10b   : > { %s589_s25 = scalar_lea.hbm %s822_s21, 128  ;;  %s593_s18 = scalar_lea.hbm %s867_s3, 256 }
 0x10c   : > { %p590_p7 = scmp.ne.s32.totalorder %s822_s21, %s589_s25  ;;  %p594_p9 = scmp.lt.s32.totalorder %s822_s21, %s867_s3 }
 0x10d   : > { %p595_p11 = scmp.lt.s32.totalorder %s593_s18, %s589_s25 }
 0x10e   : > { %p591_p6 = pnand %p590_p7, %p775_p13 }
 0x10f   : > { %p596_p12 = por %p595_p11, %p594_p9 }
 0x110   : > { %p592_p4 = pneg %p591_p6 }
 0x112   : > { %p597_p1 = pnand %p596_p12, %p592_p4 }
 0x114   : > { %600 = shalt.err (!%p597_p1)
}
 0x115   : > { %450 = dma.vmem_to_hbm [thread:$0]  (%p775_p13), %s322_s29, 128, %s822_s21, %s307_s5  }
 0x116 PF: > { %s333_s22 = sand.u32 1, %s639_s12   ;;  %p879_p8 = scmp.ne.s32.totalorder %s872_s23, 0 }
 0x117   : > { %p880_p10 = scmp.ge.s32.totalorder %s659_s17, 2  ;;  %s334_s24 = scalar_lea.sflag [#allocation4], %s333_s22 }
 0x119   : > { %p461_p0 = pnand %p880_p10, %p879_p8 }
 0x11b   : > { %p462_p2 = pneg %p461_p0 }
 0x11d   : > { %634 = dma.done.wait (%p462_p2), %s334_s24, 128  }
 0x11e   : > { %636 = vsyncadd (%p462_p2), %s334_s24, 4294967168  ;;  %s20_s17 = sadd.s32 1, %s659_s17   ;;  %s881_s12 = smov %s643_s13 }
 0x11f   : > { %p17_p3 = scmp.ge.s32.totalorder %s20_s17, 4   ;;  %s882_s13 = smov %s647_s14 }
 0x120   : > { %s883_s14 = smov %s784_s19  ;;  %s884_s15 = smov %s655_s16 }
 0x121   : > { %s885_s16 = smov %s887_s28  ;;  %19 = sbr.rel (!%p17_p3) target bundleno = 7 (0x7), region = 81 }
 0x126   :  { %339 = vsyncpa [#allocation3], 1 }
 0x127   :  { %341 = vsyncpa [#allocation3 + $0x1], 1 }
 0x128   :  { %342 = vsyncpa [#allocation6], 1 }
 0x129   :  { %343 = vsyncpa [#allocation4], 1 }
 0x12a   :  { %345 = vsyncpa [#allocation4 + $0x1], 1 }

</bundles_post_ra>
